<compile_context>
chip_gen: v7x
topology: tpu7x:2x2x1
jax: 0.10.0
libtpu: 0.0.40
codegen_flags: <defaults>
</compile_context>

<pallas_src>
import functools

import jax
import jax.numpy as jnp
from jax.experimental import pallas as pl
from jax.experimental.pallas import tpu as pltpu

_LANES = 128
_HALF = _LANES // 2


def _discriminator_compute(x_ref, w1_ref, b1_ref, w2_ref, b2_ref, *, use_bf16_matmul):
    """Shared math: Linear -> LeakyReLU(0.2) -> Linear -> exact softmax."""
    x = x_ref[...]
    w1 = w1_ref[...]
    w2 = w2_ref[...]
    if use_bf16_matmul:
        # bf16 MXU operands, f32 accumulation (v6e/v7x fast MXU path).
        x = x.astype(jnp.bfloat16)
        w1 = w1.astype(jnp.bfloat16)
        w2 = w2.astype(jnp.bfloat16)

    # TODO(synk): input_dropout / dropout_layer are identity at eval; a
    # training-mode kernel would use pltpu.prng_seed + pltpu.prng_random_bits.

    # hidden_layer: x @ W1 + b1  (MXU matmul, f32 accumulation)
    h = jnp.dot(x, w1, preferred_element_type=jnp.float32) + b1_ref[...]
    # LeakyReLU(0.2): for slope in (0,1), max(h, 0.2*h) == leaky_relu(h).
    act = jnp.maximum(h, 0.2 * h)

    lhs2 = act.astype(jnp.bfloat16) if use_bf16_matmul else act
    # Padded class lanes carry a -1e30 bias (set host-side), so exp() underflows
    # to exactly 0 there and no in-kernel masking is needed.
    logits = jnp.dot(lhs2, w2, preferred_element_type=jnp.float32) + b2_ref[...]

    m = jnp.max(logits, axis=-1, keepdims=True)
    e = jnp.exp(logits - m)
    probs = e / jnp.sum(e, axis=-1, keepdims=True)   # exact reciprocal (tiny denom)
    return act, logits, probs


def _kernel_packed(x_ref, w1_ref, b1_ref, w2_ref, b2_ref,
                   last_rep_ref, packed_ref, *, use_bf16_matmul):
    act, logits, probs = _discriminator_compute(
        x_ref, w1_ref, b1_ref, w2_ref, b2_ref, use_bf16_matmul=use_bf16_matmul)
    last_rep_ref[...] = act.astype(last_rep_ref.dtype)
    # One lane-dense (TB, 128) output stream: logits in [0,64), probs in [64,128).
    packed_ref[:, :_HALF] = logits.astype(packed_ref.dtype)
    packed_ref[:, _HALF:] = probs.astype(packed_ref.dtype)


def _kernel_split(x_ref, w1_ref, b1_ref, w2_ref, b2_ref,
                  last_rep_ref, logits_ref, probs_ref, *, use_bf16_matmul):
    act, logits, probs = _discriminator_compute(
        x_ref, w1_ref, b1_ref, w2_ref, b2_ref, use_bf16_matmul=use_bf16_matmul)
    last_rep_ref[...] = act.astype(last_rep_ref.dtype)
    logits_ref[...] = logits.astype(logits_ref.dtype)
    probs_ref[...] = probs.astype(probs_ref.dtype)


def discriminator_forward(x, w1, b1, w2, b2, *, block_b=512,
                          last_rep_dtype=jnp.float32, use_bf16_matmul=False):
    """x: [B, input_size]; w1: [input_size, hidden]; b1: [1, hidden];
       w2: [hidden, out]; b2: [1, out].  Returns (last_rep, logits, probs)."""
    x = jnp.asarray(x)
    w1 = jnp.asarray(w1)
    w2 = jnp.asarray(w2)
    b1 = jnp.asarray(b1).reshape(1, -1)
    b2 = jnp.asarray(b2).reshape(1, -1)

    B, K = x.shape
    H = w1.shape[1]
    O = w2.shape[1]

    # ---- batch tiling -------------------------------------------------------
    block_b = max(8, (int(block_b) + 7) // 8 * 8)
    if B >= 16:
        # At least two grid tiles so dimension_semantics=("parallel",) really
        # shards across both v7x TensorCores; never exceed block_b.
        tb_half = (pl.cdiv(B, 2) + 7) // 8 * 8
        TB = min(block_b, tb_half)
    else:
        TB = B  # single tiny tile; block dims equal full array dims
    B_pad = pl.cdiv(B, TB) * TB
    x_p = jnp.pad(x, ((0, B_pad - B), (0, 0))) if B_pad != B else x
    n_tiles = B_pad // TB

    # logits+probs fit into a single 128-lane packed output?
    pack_ok = (O <= _HALF)

    # Physical VMEM -> scoped-limit cap with compiler-scratch headroom
    # (v7x: 64 MiB/TC -> ~52 MiB cap; v5e/v6e: up to 100 MiB).
    try:
        phys_vmem = int(pltpu.get_tpu_info().vmem_capacity_bytes)
    except Exception:
        phys_vmem = 64 << 20  # assume the smallest (v7x per-TensorCore)
    vmem_cap = max(32 << 20, min(phys_vmem - (12 << 20), 100 << 20))

    def _build_and_run(pack_outputs, single_buffer_weights):
        O_pad = _HALF if pack_outputs else pl.cdiv(O, _LANES) * _LANES
        if O_pad != O:
            w2_p = jnp.zeros((H, O_pad), w2.dtype).at[:, :O].set(w2)
            # Padded class lanes: huge negative bias -> exact softmax without
            # any in-kernel masking (done once on the host).
            b2_p = jnp.full((1, O_pad), -1e30, b2.dtype).at[:, :O].set(b2)
        else:
            w2_p, b2_p = w2, b2

        # Honest VMEM accounting: streamed tiles double-buffered; weights
        # single- or double-buffered depending on pipeline_mode support.
        out_tile_elems = TB * _LANES if pack_outputs else 2 * TB * O_pad
        stream_elems = TB * K + TB * H + out_tile_elems
        weight_elems = K * H + H + H * O_pad + O_pad
        wbuf = 1 if single_buffer_weights else 2
        vmem_limit = int(1.25 * 4 * (2 * stream_elems + wbuf * weight_elems)) + (8 << 20)
        vmem_limit = min(max(vmem_limit, 16 << 20), vmem_cap)

        wkw = {"pipeline_mode": pl.Buffered(1)} if single_buffer_weights else {}
        in_specs = [
            pl.BlockSpec((TB, K), lambda i: (i, 0)),            # x: batch-tiled
            pl.BlockSpec((K, H), lambda i: (0, 0), **wkw),      # w1: resident
            pl.BlockSpec((1, H), lambda i: (0, 0), **wkw),      # b1: resident
            pl.BlockSpec((H, O_pad), lambda i: (0, 0), **wkw),  # w2: resident
            pl.BlockSpec((1, O_pad), lambda i: (0, 0), **wkw),  # b2: resident
        ]
        if pack_outputs:
            kernel = functools.partial(_kernel_packed,
                                       use_bf16_matmul=use_bf16_matmul)
            out_shape = (
                jax.ShapeDtypeStruct((B_pad, H), last_rep_dtype),
                jax.ShapeDtypeStruct((B_pad, _LANES), jnp.float32),
            )
            out_specs = [
                pl.BlockSpec((TB, H), lambda i: (i, 0)),
                pl.BlockSpec((TB, _LANES), lambda i: (i, 0)),
            ]
        else:
            kernel = functools.partial(_kernel_split,
                                       use_bf16_matmul=use_bf16_matmul)
            out_shape = (
                jax.ShapeDtypeStruct((B_pad, H), last_rep_dtype),
                jax.ShapeDtypeStruct((B_pad, O_pad), jnp.float32),
                jax.ShapeDtypeStruct((B_pad, O_pad), jnp.float32),
            )
            out_specs = [
                pl.BlockSpec((TB, H), lambda i: (i, 0)),
                pl.BlockSpec((TB, O_pad), lambda i: (i, 0)),
                pl.BlockSpec((TB, O_pad), lambda i: (i, 0)),
            ]

        return pl.pallas_call(
            kernel,
            out_shape=out_shape,
            grid_spec=pltpu.PrefetchScalarGridSpec(
                num_scalar_prefetch=0,
                grid=(n_tiles,),
                in_specs=in_specs,
                out_specs=out_specs,
            ),
            compiler_params=pltpu.CompilerParams(
                dimension_semantics=("parallel",),
                vmem_limit_bytes=vmem_limit,
            ),
        )(x_p, w1, b1, w2_p, b2_p)

    # Preferred configuration first; degrade gracefully if this jax/Mosaic
    # version rejects pl.Buffered(1) or the packed lane-offset stores.
    attempts = ((pack_ok, True), (pack_ok, False), (False, False))
    outs, used_pack, last_exc = None, False, None
    for pack_outputs, single_buf in attempts:
        try:
            outs = _build_and_run(pack_outputs, single_buf)
            used_pack = pack_outputs
            break
        except Exception as e:  # pragma: no cover - fallback path
            last_exc = e
    if outs is None:
        raise last_exc

    # Strip batch padding and unpack the class lanes outside the kernel.
    if used_pack:
        last_rep, packed = outs
        logits = packed[:B, :O]
        probs = packed[:B, _HALF:_HALF + O]
    else:
        last_rep, logits_p, probs_p = outs
        logits = logits_p[:B, :O]
        probs = probs_p[:B, :O]
    return last_rep[:B], logits, probs


def init_linear_params(key, in_features, out_features):
    """Deterministic init mimicking nn.Linear default (uniform +-1/sqrt(in))."""
    k_w, k_b = jax.random.split(key)
    bound = 1.0 / jnp.sqrt(jnp.float32(in_features))
    # Stored as [in, out] (pre-transposed relative to PyTorch's [out, in]).
    w = jax.random.uniform(k_w, (in_features, out_features),
                           dtype=jnp.float32, minval=-bound, maxval=bound)
    b = jax.random.uniform(k_b, (1, out_features),
                           dtype=jnp.float32, minval=-bound, maxval=bound)
    return w, b


def _reference(x, w1, b1, w2, b2):
    h = x @ w1 + b1
    act = jnp.where(h >= 0, h, 0.2 * h)
    logits = act @ w2 + b2
    probs = jax.nn.softmax(logits, axis=-1)
    return act, logits, probs


if __name__ == "__main__":
    key = jax.random.PRNGKey(0)

    # --- Small shapes consistent with the module (output_size=3). ---
    batch, input_size, hidden_size, output_size = 8, 32, 32, 3
    k_x, k_l1, k_l2, k_x2 = jax.random.split(key, 4)

    x = jax.random.normal(k_x, (batch, input_size), dtype=jnp.float32)
    w1, b1 = init_linear_params(k_l1, input_size, hidden_size)
    w2, b2 = init_linear_params(k_l2, hidden_size, output_size)

    last_rep, logits, probs = discriminator_forward(x, w1, b1, w2, b2)
    jax.block_until_ready((last_rep, logits, probs))

    act_ref, logits_ref, probs_ref = _reference(x, w1, b1, w2, b2)
    assert jnp.allclose(last_rep, act_ref, atol=1e-4, rtol=1e-5)
    assert jnp.allclose(logits, logits_ref, atol=1e-4, rtol=1e-5)
    assert jnp.allclose(probs, probs_ref, atol=1e-5, rtol=1e-5)  # exact softmax

    # --- Ragged batch, >= 2 grid tiles (megacore path), default tile size. ---
    x2 = jax.random.normal(k_x2, (70, input_size), dtype=jnp.float32)
    lr2, lg2, pr2 = discriminator_forward(x2, w1, b1, w2, b2)
    jax.block_until_ready((lr2, lg2, pr2))
    a2, l2, p2 = _reference(x2, w1, b1, w2, b2)
    assert lr2.shape == a2.shape and lg2.shape == l2.shape and pr2.shape == p2.shape
    assert jnp.allclose(lr2, a2, atol=1e-4, rtol=1e-5)
    assert jnp.allclose(lg2, l2, atol=1e-4, rtol=1e-5)
    assert jnp.allclose(pr2, p2, atol=1e-5, rtol=1e-5)

    # --- Small explicit tile -> 3 grid steps, exercises multi-tile pipelining. ---
    lr3, lg3, pr3 = discriminator_forward(x2, w1, b1, w2, b2, block_b=32)
    jax.block_until_ready((lr3, lg3, pr3))
    assert jnp.allclose(lr3, a2, atol=1e-4, rtol=1e-5)
    assert jnp.allclose(lg3, l2, atol=1e-4, rtol=1e-5)
    assert jnp.allclose(pr3, p2, atol=1e-5, rtol=1e-5)

    # --- Optional bf16-MXU operand path (v6e/v7x); looser tolerance. ---
    lr4, lg4, pr4 = discriminator_forward(x, w1, b1, w2, b2, use_bf16_matmul=True)
    jax.block_until_ready((lr4, lg4, pr4))
    assert jnp.allclose(lr4, act_ref, atol=2e-2, rtol=2e-2)
    assert jnp.allclose(pr4, probs_ref, atol=2e-2, rtol=2e-2)

    print("KERNEL_OK")
</pallas_src>

<mosaic_0001>
module attributes {stable_mosaic.version = 11 : i64} {
  func.func @_kernel_packed(%arg0: i32, %arg1: memref<8x32xf32, #tpu.memory_space<vmem>>, %arg2: memref<32x32xf32, #tpu.memory_space<vmem>>, %arg3: memref<1x32xf32, #tpu.memory_space<vmem>>, %arg4: memref<32x64xf32, #tpu.memory_space<vmem>>, %arg5: memref<1x64xf32, #tpu.memory_space<vmem>>, %arg6: memref<8x32xf32, #tpu.memory_space<vmem>>, %arg7: memref<8x128xf32, #tpu.memory_space<vmem>>) attributes {dimension_semantics = [#tpu.dimension_semantics<parallel>], iteration_bounds = array<i64: 1>, scalar_prefetch = 0 : i64, scratch_operands = 0 : i64, tpu.core_type = #tpu.core_type<tc>, window_params = [{transform_indices = @transform_0, window_bounds = array<i64: 8, 32>}, {pipeline_mode = #tpu.pipeline_mode<synchronous>, transform_indices = @transform_1, window_bounds = array<i64: 32, 32>}, {pipeline_mode = #tpu.pipeline_mode<synchronous>, transform_indices = @transform_2, window_bounds = array<i64: 1, 32>}, {pipeline_mode = #tpu.pipeline_mode<synchronous>, transform_indices = @transform_3, window_bounds = array<i64: 32, 64>}, {pipeline_mode = #tpu.pipeline_mode<synchronous>, transform_indices = @transform_4, window_bounds = array<i64: 1, 64>}, {transform_indices = @transform_5, window_bounds = array<i64: 8, 32>}, {transform_indices = @transform_6, window_bounds = array<i64: 8, 128>}]} {
    %c0 = arith.constant 0 : index
    %c0_0 = arith.constant 0 : index
    %0 = vector.load %arg1[%c0, %c0_0] : memref<8x32xf32, #tpu.memory_space<vmem>>, vector<8x32xf32>
    %c0_1 = arith.constant 0 : index
    %c0_2 = arith.constant 0 : index
    %1 = vector.load %arg2[%c0_1, %c0_2] : memref<32x32xf32, #tpu.memory_space<vmem>>, vector<32x32xf32>
    %c0_3 = arith.constant 0 : index
    %c0_4 = arith.constant 0 : index
    %2 = vector.load %arg4[%c0_3, %c0_4] : memref<32x64xf32, #tpu.memory_space<vmem>>, vector<32x64xf32>
    %cst = arith.constant dense<0.000000e+00> : vector<8x32xf32>
    %3 = tpu.matmul %0, %1, %cst {dimension_numbers = #tpu.dot_dimension_numbers<[1], [0], [0], [1], [0, 0, 1, 1], [], []>} : vector<8x32xf32>, vector<32x32xf32>, vector<8x32xf32> -> vector<8x32xf32>
    %c0_5 = arith.constant 0 : index
    %c0_6 = arith.constant 0 : index
    %4 = vector.load %arg3[%c0_5, %c0_6] : memref<1x32xf32, #tpu.memory_space<vmem>>, vector<1x32xf32>
    %5 = vector.broadcast %4 : vector<1x32xf32> to vector<8x32xf32>
    %6 = arith.addf %3, %5 : vector<8x32xf32>
    %cst_7 = arith.constant 2.000000e-01 : f32
    %7 = vector.broadcast %cst_7 : f32 to vector<8x32xf32>
    %8 = arith.mulf %7, %6 : vector<8x32xf32>
    %9 = arith.maximumf %6, %8 : vector<8x32xf32>
    %cst_8 = arith.constant dense<0.000000e+00> : vector<8x64xf32>
    %10 = tpu.matmul %9, %2, %cst_8 {dimension_numbers = #tpu.dot_dimension_numbers<[1], [0], [0], [1], [0, 0, 1, 1], [], []>} : vector<8x32xf32>, vector<32x64xf32>, vector<8x64xf32> -> vector<8x64xf32>
    %c0_9 = arith.constant 0 : index
    %c0_10 = arith.constant 0 : index
    %11 = vector.load %arg5[%c0_9, %c0_10] : memref<1x64xf32, #tpu.memory_space<vmem>>, vector<1x64xf32>
    %12 = vector.broadcast %11 : vector<1x64xf32> to vector<8x64xf32>
    %13 = arith.addf %10, %12 : vector<8x64xf32>
    %cst_11 = arith.constant dense<0xFF800000> : vector<8xf32>
    %14 = vector.multi_reduction <maximumf>, %13, %cst_11 [1] : vector<8x64xf32> to vector<8xf32>
    %15 = vector.shape_cast %14 : vector<8xf32> to vector<8x1xf32>
    %16 = vector.broadcast %15 : vector<8x1xf32> to vector<8x64xf32>
    %17 = arith.subf %13, %16 : vector<8x64xf32>
    %18 = math.exp %17 : vector<8x64xf32>
    %cst_12 = arith.constant dense<0.000000e+00> : vector<8xf32>
    %19 = vector.multi_reduction <add>, %18, %cst_12 [1] : vector<8x64xf32> to vector<8xf32>
    %20 = vector.shape_cast %19 : vector<8xf32> to vector<8x1xf32>
    %21 = vector.broadcast %20 : vector<8x1xf32> to vector<8x64xf32>
    %22 = arith.divf %18, %21 : vector<8x64xf32>
    %c0_13 = arith.constant 0 : index
    %c0_14 = arith.constant 0 : index
    %23 = vector.load %arg6[%c0_13, %c0_14] : memref<8x32xf32, #tpu.memory_space<vmem>>, vector<8x32xf32>
    tpu.vector_store %arg6[%c0_13, %c0_14], %9 {strides = array<i32>} : memref<8x32xf32, #tpu.memory_space<vmem>>, vector<8x32xf32>,
    %c0_15 = arith.constant 0 : index
    %c0_16 = arith.constant 0 : index
    %24 = vector.load %arg7[%c0_15, %c0_16] : memref<8x128xf32, #tpu.memory_space<vmem>>, vector<8x64xf32>
    tpu.vector_store %arg7[%c0_15, %c0_16], %13 {strides = array<i32>} : memref<8x128xf32, #tpu.memory_space<vmem>>, vector<8x64xf32>,
    %c0_17 = arith.constant 0 : index
    %c64 = arith.constant 64 : index
    %25 = vector.load %arg7[%c0_17, %c64] : memref<8x128xf32, #tpu.memory_space<vmem>>, vector<8x64xf32>
    tpu.vector_store %arg7[%c0_17, %c64], %22 {strides = array<i32>} : memref<8x128xf32, #tpu.memory_space<vmem>>, vector<8x64xf32>,
    return
  }
  func.func @transform_0(%arg0: i32) -> (i32, i32) {
    %c0_i32 = arith.constant 0 : i32
    %c0_i32_0 = arith.constant 0 : i32
    return %arg0, %c0_i32 : i32, i32
  }
  func.func @transform_1(%arg0: i32) -> (i32, i32) {
    %c0_i32 = arith.constant 0 : i32
    %c0_i32_0 = arith.constant 0 : i32
    %c0_i32_1 = arith.constant 0 : i32
    return %c0_i32, %c0_i32_0 : i32, i32
  }
  func.func @transform_2(%arg0: i32) -> (i32, i32) {
    %c0_i32 = arith.constant 0 : i32
    %c0_i32_0 = arith.constant 0 : i32
    %c0_i32_1 = arith.constant 0 : i32
    return %c0_i32, %c0_i32_0 : i32, i32
  }
  func.func @transform_3(%arg0: i32) -> (i32, i32) {
    %c0_i32 = arith.constant 0 : i32
    %c0_i32_0 = arith.constant 0 : i32
    %c0_i32_1 = arith.constant 0 : i32
    return %c0_i32, %c0_i32_0 : i32, i32
  }
  func.func @transform_4(%arg0: i32) -> (i32, i32) {
    %c0_i32 = arith.constant 0 : i32
    %c0_i32_0 = arith.constant 0 : i32
    %c0_i32_1 = arith.constant 0 : i32
    return %c0_i32, %c0_i32_0 : i32, i32
  }
  func.func @transform_5(%arg0: i32) -> (i32, i32) {
    %c0_i32 = arith.constant 0 : i32
    %c0_i32_0 = arith.constant 0 : i32
    return %arg0, %c0_i32 : i32, i32
  }
  func.func @transform_6(%arg0: i32) -> (i32, i32) {
    %c0_i32 = arith.constant 0 : i32
    %c0_i32_0 = arith.constant 0 : i32
    return %arg0, %c0_i32 : i32, i32
  }
}

module attributes {stable_mosaic.version = 11 : i64} {
  func.func @_kernel_packed(%arg0: i32, %arg1: memref<8x32xf32, #tpu.memory_space<vmem>>, %arg2: memref<32x32xf32, #tpu.memory_space<vmem>>, %arg3: memref<1x32xf32, #tpu.memory_space<vmem>>, %arg4: memref<32x64xf32, #tpu.memory_space<vmem>>, %arg5: memref<1x64xf32, #tpu.memory_space<vmem>>, %arg6: memref<8x32xf32, #tpu.memory_space<vmem>>, %arg7: memref<8x128xf32, #tpu.memory_space<vmem>>) attributes {dimension_semantics = [#tpu.dimension_semantics<parallel>], iteration_bounds = array<i64: 1>, scalar_prefetch = 0 : i64, scratch_operands = 0 : i64, tpu.core_type = #tpu.core_type<tc>, window_params = [{transform_indices = @transform_0, window_bounds = array<i64: 8, 32>}, {pipeline_mode = #tpu.pipeline_mode<synchronous>, transform_indices = @transform_1, window_bounds = array<i64: 32, 32>}, {pipeline_mode = #tpu.pipeline_mode<synchronous>, transform_indices = @transform_2, window_bounds = array<i64: 1, 32>}, {pipeline_mode = #tpu.pipeline_mode<synchronous>, transform_indices = @transform_3, window_bounds = array<i64: 32, 64>}, {pipeline_mode = #tpu.pipeline_mode<synchronous>, transform_indices = @transform_4, window_bounds = array<i64: 1, 64>}, {transform_indices = @transform_5, window_bounds = array<i64: 8, 32>}, {transform_indices = @transform_6, window_bounds = array<i64: 8, 128>}]} {
    %c0 = arith.constant 0 : index
    %c0_0 = arith.constant 0 : index
    %0 = vector.load %arg1[%c0, %c0_0] : memref<8x32xf32, #tpu.memory_space<vmem>>, vector<8x32xf32>
    %c0_1 = arith.constant 0 : index
    %c0_2 = arith.constant 0 : index
    %1 = vector.load %arg2[%c0_1, %c0_2] : memref<32x32xf32, #tpu.memory_space<vmem>>, vector<32x32xf32>
    %c0_3 = arith.constant 0 : index
    %c0_4 = arith.constant 0 : index
    %2 = vector.load %arg4[%c0_3, %c0_4] : memref<32x64xf32, #tpu.memory_space<vmem>>, vector<32x64xf32>
    %cst = arith.constant dense<0.000000e+00> : vector<8x32xf32>
    %3 = tpu.matmul %0, %1, %cst {dimension_numbers = #tpu.dot_dimension_numbers<[1], [0], [0], [1], [0, 0, 1, 1], [], []>} : vector<8x32xf32>, vector<32x32xf32>, vector<8x32xf32> -> vector<8x32xf32>
    %c0_5 = arith.constant 0 : index
    %c0_6 = arith.constant 0 : index
    %4 = vector.load %arg3[%c0_5, %c0_6] : memref<1x32xf32, #tpu.memory_space<vmem>>, vector<1x32xf32>
    %5 = vector.broadcast %4 : vector<1x32xf32> to vector<8x32xf32>
    %6 = arith.addf %3, %5 : vector<8x32xf32>
    %cst_7 = arith.constant 2.000000e-01 : f32
    %7 = vector.broadcast %cst_7 : f32 to vector<8x32xf32>
    %8 = arith.mulf %7, %6 : vector<8x32xf32>
    %9 = arith.maximumf %6, %8 : vector<8x32xf32>
    %cst_8 = arith.constant dense<0.000000e+00> : vector<8x64xf32>
    %10 = tpu.matmul %9, %2, %cst_8 {dimension_numbers = #tpu.dot_dimension_numbers<[1], [0], [0], [1], [0, 0, 1, 1], [], []>} : vector<8x32xf32>, vector<32x64xf32>, vector<8x64xf32> -> vector<8x64xf32>
    %c0_9 = arith.constant 0 : index
    %c0_10 = arith.constant 0 : index
    %11 = vector.load %arg5[%c0_9, %c0_10] : memref<1x64xf32, #tpu.memory_space<vmem>>, vector<1x64xf32>
    %12 = vector.broadcast %11 : vector<1x64xf32> to vector<8x64xf32>
    %13 = arith.addf %10, %12 : vector<8x64xf32>
    %cst_11 = arith.constant dense<0xFF800000> : vector<8xf32>
    %14 = vector.multi_reduction <maximumf>, %13, %cst_11 [1] : vector<8x64xf32> to vector<8xf32>
    %15 = vector.shape_cast %14 : vector<8xf32> to vector<8x1xf32>
    %16 = vector.broadcast %15 : vector<8x1xf32> to vector<8x64xf32>
    %17 = arith.subf %13, %16 : vector<8x64xf32>
    %18 = math.exp %17 : vector<8x64xf32>
    %cst_12 = arith.constant dense<0.000000e+00> : vector<8xf32>
    %19 = vector.multi_reduction <add>, %18, %cst_12 [1] : vector<8x64xf32> to vector<8xf32>
    %20 = vector.shape_cast %19 : vector<8xf32> to vector<8x1xf32>
    %21 = vector.broadcast %20 : vector<8x1xf32> to vector<8x64xf32>
    %22 = arith.divf %18, %21 : vector<8x64xf32>
    %c0_13 = arith.constant 0 : index
    %c0_14 = arith.constant 0 : index
    %23 = vector.load %arg6[%c0_13, %c0_14] : memref<8x32xf32, #tpu.memory_space<vmem>>, vector<8x32xf32>
    tpu.vector_store %arg6[%c0_13, %c0_14], %9 {strides = array<i32>} : memref<8x32xf32, #tpu.memory_space<vmem>>, vector<8x32xf32>,
    %c0_15 = arith.constant 0 : index
    %c0_16 = arith.constant 0 : index
    %24 = vector.load %arg7[%c0_15, %c0_16] : memref<8x128xf32, #tpu.memory_space<vmem>>, vector<8x64xf32>
    tpu.vector_store %arg7[%c0_15, %c0_16], %13 {strides = array<i32>} : memref<8x128xf32, #tpu.memory_space<vmem>>, vector<8x64xf32>,
    %c0_17 = arith.constant 0 : index
    %c64 = arith.constant 64 : index
    %25 = vector.load %arg7[%c0_17, %c64] : memref<8x128xf32, #tpu.memory_space<vmem>>, vector<8x64xf32>
    tpu.vector_store %arg7[%c0_17, %c64], %22 {strides = array<i32>} : memref<8x128xf32, #tpu.memory_space<vmem>>, vector<8x64xf32>,
    return
  }
  func.func @transform_0(%arg0: i32) -> (i32, i32) {
    %c0_i32 = arith.constant 0 : i32
    %c0_i32_0 = arith.constant 0 : i32
    return %arg0, %c0_i32 : i32, i32
  }
  func.func @transform_1(%arg0: i32) -> (i32, i32) {
    %c0_i32 = arith.constant 0 : i32
    %c0_i32_0 = arith.constant 0 : i32
    %c0_i32_1 = arith.constant 0 : i32
    return %c0_i32, %c0_i32_0 : i32, i32
  }
  func.func @transform_2(%arg0: i32) -> (i32, i32) {
    %c0_i32 = arith.constant 0 : i32
    %c0_i32_0 = arith.constant 0 : i32
    %c0_i32_1 = arith.constant 0 : i32
    return %c0_i32, %c0_i32_0 : i32, i32
  }
  func.func @transform_3(%arg0: i32) -> (i32, i32) {
    %c0_i32 = arith.constant 0 : i32
    %c0_i32_0 = arith.constant 0 : i32
    %c0_i32_1 = arith.constant 0 : i32
    return %c0_i32, %c0_i32_0 : i32, i32
  }
  func.func @transform_4(%arg0: i32) -> (i32, i32) {
    %c0_i32 = arith.constant 0 : i32
    %c0_i32_0 = arith.constant 0 : i32
    %c0_i32_1 = arith.constant 0 : i32
    return %c0_i32, %c0_i32_0 : i32, i32
  }
  func.func @transform_5(%arg0: i32) -> (i32, i32) {
    %c0_i32 = arith.constant 0 : i32
    %c0_i32_0 = arith.constant 0 : i32
    return %arg0, %c0_i32 : i32, i32
  }
  func.func @transform_6(%arg0: i32) -> (i32, i32) {
    %c0_i32 = arith.constant 0 : i32
    %c0_i32_0 = arith.constant 0 : i32
    return %arg0, %c0_i32 : i32, i32
  }
}

module attributes {stable_mosaic.version = 11 : i64} {
  func.func @_kernel_split(%arg0: i32, %arg1: memref<8x32xf32, #tpu.memory_space<vmem>>, %arg2: memref<32x32xf32, #tpu.memory_space<vmem>>, %arg3: memref<1x32xf32, #tpu.memory_space<vmem>>, %arg4: memref<32x128xf32, #tpu.memory_space<vmem>>, %arg5: memref<1x128xf32, #tpu.memory_space<vmem>>, %arg6: memref<8x32xf32, #tpu.memory_space<vmem>>, %arg7: memref<8x128xf32, #tpu.memory_space<vmem>>, %arg8: memref<8x128xf32, #tpu.memory_space<vmem>>) attributes {dimension_semantics = [#tpu.dimension_semantics<parallel>], iteration_bounds = array<i64: 1>, scalar_prefetch = 0 : i64, scratch_operands = 0 : i64, tpu.core_type = #tpu.core_type<tc>, window_params = [{transform_indices = @transform_0, window_bounds = array<i64: 8, 32>}, {pipeline_mode = #tpu.pipeline_mode<synchronous>, transform_indices = @transform_1, window_bounds = array<i64: 32, 32>}, {pipeline_mode = #tpu.pipeline_mode<synchronous>, transform_indices = @transform_2, window_bounds = array<i64: 1, 32>}, {pipeline_mode = #tpu.pipeline_mode<synchronous>, transform_indices = @transform_3, window_bounds = array<i64: 32, 128>}, {pipeline_mode = #tpu.pipeline_mode<synchronous>, transform_indices = @transform_4, window_bounds = array<i64: 1, 128>}, {transform_indices = @transform_5, window_bounds = array<i64: 8, 32>}, {transform_indices = @transform_6, window_bounds = array<i64: 8, 128>}, {transform_indices = @transform_7, window_bounds = array<i64: 8, 128>}]} {
    %c0 = arith.constant 0 : index
    %c0_0 = arith.constant 0 : index
    %0 = vector.load %arg1[%c0, %c0_0] : memref<8x32xf32, #tpu.memory_space<vmem>>, vector<8x32xf32>
    %c0_1 = arith.constant 0 : index
    %c0_2 = arith.constant 0 : index
    %1 = vector.load %arg2[%c0_1, %c0_2] : memref<32x32xf32, #tpu.memory_space<vmem>>, vector<32x32xf32>
    %c0_3 = arith.constant 0 : index
    %c0_4 = arith.constant 0 : index
    %2 = vector.load %arg4[%c0_3, %c0_4] : memref<32x128xf32, #tpu.memory_space<vmem>>, vector<32x128xf32>
    %cst = arith.constant dense<0.000000e+00> : vector<8x32xf32>
    %3 = tpu.matmul %0, %1, %cst {dimension_numbers = #tpu.dot_dimension_numbers<[1], [0], [0], [1], [0, 0, 1, 1], [], []>} : vector<8x32xf32>, vector<32x32xf32>, vector<8x32xf32> -> vector<8x32xf32>
    %c0_5 = arith.constant 0 : index
    %c0_6 = arith.constant 0 : index
    %4 = vector.load %arg3[%c0_5, %c0_6] : memref<1x32xf32, #tpu.memory_space<vmem>>, vector<1x32xf32>
    %5 = vector.broadcast %4 : vector<1x32xf32> to vector<8x32xf32>
    %6 = arith.addf %3, %5 : vector<8x32xf32>
    %cst_7 = arith.constant 2.000000e-01 : f32
    %7 = vector.broadcast %cst_7 : f32 to vector<8x32xf32>
    %8 = arith.mulf %7, %6 : vector<8x32xf32>
    %9 = arith.maximumf %6, %8 : vector<8x32xf32>
    %cst_8 = arith.constant dense<0.000000e+00> : vector<8x128xf32>
    %10 = tpu.matmul %9, %2, %cst_8 {dimension_numbers = #tpu.dot_dimension_numbers<[1], [0], [0], [1], [0, 0, 1, 1], [], []>} : vector<8x32xf32>, vector<32x128xf32>, vector<8x128xf32> -> vector<8x128xf32>
    %c0_9 = arith.constant 0 : index
    %c0_10 = arith.constant 0 : index
    %11 = vector.load %arg5[%c0_9, %c0_10] : memref<1x128xf32, #tpu.memory_space<vmem>>, vector<1x128xf32>
    %12 = vector.broadcast %11 : vector<1x128xf32> to vector<8x128xf32>
    %13 = arith.addf %10, %12 : vector<8x128xf32>
    %cst_11 = arith.constant dense<0xFF800000> : vector<8xf32>
    %14 = vector.multi_reduction <maximumf>, %13, %cst_11 [1] : vector<8x128xf32> to vector<8xf32>
    %15 = vector.shape_cast %14 : vector<8xf32> to vector<8x1xf32>
    %16 = vector.broadcast %15 : vector<8x1xf32> to vector<8x128xf32>
    %17 = arith.subf %13, %16 : vector<8x128xf32>
    %18 = math.exp %17 : vector<8x128xf32>
    %cst_12 = arith.constant dense<0.000000e+00> : vector<8xf32>
    %19 = vector.multi_reduction <add>, %18, %cst_12 [1] : vector<8x128xf32> to vector<8xf32>
    %20 = vector.shape_cast %19 : vector<8xf32> to vector<8x1xf32>
    %21 = vector.broadcast %20 : vector<8x1xf32> to vector<8x128xf32>
    %22 = arith.divf %18, %21 : vector<8x128xf32>
    %c0_13 = arith.constant 0 : index
    %c0_14 = arith.constant 0 : index
    %23 = vector.load %arg6[%c0_13, %c0_14] : memref<8x32xf32, #tpu.memory_space<vmem>>, vector<8x32xf32>
    tpu.vector_store %arg6[%c0_13, %c0_14], %9 {strides = array<i32>} : memref<8x32xf32, #tpu.memory_space<vmem>>, vector<8x32xf32>,
    %c0_15 = arith.constant 0 : index
    %c0_16 = arith.constant 0 : index
    %24 = vector.load %arg7[%c0_15, %c0_16] : memref<8x128xf32, #tpu.memory_space<vmem>>, vector<8x128xf32>
    tpu.vector_store %arg7[%c0_15, %c0_16], %13 {strides = array<i32>} : memref<8x128xf32, #tpu.memory_space<vmem>>, vector<8x128xf32>,
    %c0_17 = arith.constant 0 : index
    %c0_18 = arith.constant 0 : index
    %25 = vector.load %arg8[%c0_17, %c0_18] : memref<8x128xf32, #tpu.memory_space<vmem>>, vector<8x128xf32>
    tpu.vector_store %arg8[%c0_17, %c0_18], %22 {strides = array<i32>} : memref<8x128xf32, #tpu.memory_space<vmem>>, vector<8x128xf32>,
    return
  }
  func.func @transform_0(%arg0: i32) -> (i32, i32) {
    %c0_i32 = arith.constant 0 : i32
    %c0_i32_0 = arith.constant 0 : i32
    return %arg0, %c0_i32 : i32, i32
  }
  func.func @transform_1(%arg0: i32) -> (i32, i32) {
    %c0_i32 = arith.constant 0 : i32
    %c0_i32_0 = arith.constant 0 : i32
    %c0_i32_1 = arith.constant 0 : i32
    return %c0_i32, %c0_i32_0 : i32, i32
  }
  func.func @transform_2(%arg0: i32) -> (i32, i32) {
    %c0_i32 = arith.constant 0 : i32
    %c0_i32_0 = arith.constant 0 : i32
    %c0_i32_1 = arith.constant 0 : i32
    return %c0_i32, %c0_i32_0 : i32, i32
  }
  func.func @transform_3(%arg0: i32) -> (i32, i32) {
    %c0_i32 = arith.constant 0 : i32
    %c0_i32_0 = arith.constant 0 : i32
    %c0_i32_1 = arith.constant 0 : i32
    return %c0_i32, %c0_i32_0 : i32, i32
  }
  func.func @transform_4(%arg0: i32) -> (i32, i32) {
    %c0_i32 = arith.constant 0 : i32
    %c0_i32_0 = arith.constant 0 : i32
    %c0_i32_1 = arith.constant 0 : i32
    return %c0_i32, %c0_i32_0 : i32, i32
  }
  func.func @transform_5(%arg0: i32) -> (i32, i32) {
    %c0_i32 = arith.constant 0 : i32
    %c0_i32_0 = arith.constant 0 : i32
    return %arg0, %c0_i32 : i32, i32
  }
  func.func @transform_6(%arg0: i32) -> (i32, i32) {
    %c0_i32 = arith.constant 0 : i32
    %c0_i32_0 = arith.constant 0 : i32
    return %arg0, %c0_i32 : i32, i32
  }
  func.func @transform_7(%arg0: i32) -> (i32, i32) {
    %c0_i32 = arith.constant 0 : i32
    %c0_i32_0 = arith.constant 0 : i32
    return %arg0, %c0_i32 : i32, i32
  }
}

</mosaic_0001>

<bundles_post_ra>
// kernel: tpu_custom_call.1
= control target key start
LH: loop header
LB: loop body
LE: loop exit
PB: predicated region body
PF: predicated region fallthrough
CT: control target
= control target key end

     0   :  { %12 = vsyncpa [#allocation3], 0  ;;  %s587_s0 = inlined_call_operand.hbm [shape: f32[8,32], index: 0, kind: input, shape index: {}]   ;;  %s588_s1 = inlined_call_operand.hbm [shape: f32[32,32], index: 1, kind: input, shape index: {}]   ;;  %s589_s2 = inlined_call_operand.vmem [shape: f32[1,32], index: 2, kind: input, shape index: {}]   ;;  %s590_s3 = inlined_call_operand.hbm [shape: f32[32,64], index: 3, kind: input, shape index: {}]   ;;  %s591_s4 = inlined_call_operand.vmem [shape: f32[1,64], index: 4, kind: input, shape index: {}]   ;;  %s592_s5 = inlined_call_operand.hbm [shape: f32[8,32], index: 5, kind: output, shape index: {0}]   ;;  %s593_s6 = inlined_call_operand.hbm [shape: f32[8,128], index: 6, kind: output, shape index: {1}]  }
   0x1   :  { %13 = vsyncpa [#allocation6], 0 }
   0x2   :  { %14 = vsyncpa [#allocation4], 0 }
   0x3   :  { %15 = vsyncpa [#allocation10], 0  ;;  %s466_s21 = smov [#allocation5]   ;;  %s348_s25 = scalar_lea.hbm %s588_s1, 512 }
   0x4   :  { %s31_s22 = sshll.u32 %s466_s21, 4  ;;  %p349_p0 = scmp.ne.s32.totalorder %s588_s1, %s348_s25  ;;  %s32_s22 = int_to_ptr.vmem [resolvable:$true] %s31_s22 }
   0x5   :  { %p352_p1 = scmp.lt.u32.totalorder %s348_s25, %s588_s1 }
   0x7   :  { %p354_p2 = pnand %p352_p1, %p349_p0 }
   0x9   :  { %357 = shalt.err (!%p354_p2)
}
   0xa   :  { %s358_s30 = scalar_lea.vmem %s32_s22, 512  ;;  %p363_p4 = scmp.lt.s32.totalorder %s32_s22, %s32_s22 }
   0xb   :  { %p359_p3 = scmp.ne.s32.totalorder %s32_s22, %s358_s30  ;;  %p364_p5 = scmp.lt.s32.totalorder %s358_s30, %s358_s30 }
   0xd   :  { %p365_p6 = por %p364_p5, %p363_p4 }
   0xf   :  { %p366_p7 = pnand %p365_p6, %p359_p3 }
  0x11   :  { %369 = shalt.err (!%p366_p7)
}
  0x12   :  { %s467_s7 = smov 128   ;;  %s468_s8 = smov 8  }
  0x13   :  { %37 = dma.hbm_to_vmem [thread:$0]  %s588_s1, 512, %s32_s22, [#allocation6], %s467_s7, %s467_s7, %s468_s8  }
  0x14   :  { %s469_s11 = smov [#allocation2]   ;;  %s470_s13 = smov [#allocation7]  }
  0x15   :  { %s22_s12 = sshll.u32 %s469_s11, 4  ;;  %s45_s14 = sshll.u32 %s470_s13, 4  ;;  %s23_s12 = int_to_ptr.vmem [resolvable:$true] %s22_s12  ;;  %s46_s14 = int_to_ptr.vmem [resolvable:$true] %s45_s14 }
  0x16   :  { %s370_s17 = scalar_lea.hbm %s587_s0, 128 }
  0x17   :  { %p371_p8 = scmp.ne.s32.totalorder %s587_s0, %s370_s17  ;;  %p374_p9 = scmp.lt.u32.totalorder %s370_s17, %s587_s0 }
  0x19   :  { %p376_p10 = pnand %p374_p9, %p371_p8 }
  0x1b   :  { %379 = shalt.err (!%p376_p10)
}
  0x1c   :  { %s380_s1 = scalar_lea.vmem %s23_s12, 128  ;;  %p385_p12 = scmp.lt.s32.totalorder %s23_s12, %s23_s12 }
  0x1d   :  { %p381_p11 = scmp.ne.s32.totalorder %s23_s12, %s380_s1  ;;  %p386_p13 = scmp.lt.s32.totalorder %s380_s1, %s380_s1 }
  0x1f   :  { %p387_p0 = por %p386_p13, %p385_p12 }
  0x21   :  { %p388_p1 = pnand %p387_p0, %p381_p11 }
  0x23   :  { %391 = shalt.err (!%p388_p1)
}
  0x24   :  { %25 = dma.hbm_to_vmem [thread:$0]  %s587_s0, 128, %s23_s12, [#allocation3]  }
  0x25   :  { %s392_s26 = scalar_lea.hbm %s590_s3, 512 }
  0x26   :  { %p393_p2 = scmp.ne.s32.totalorder %s590_s3, %s392_s26  ;;  %p396_p3 = scmp.lt.u32.totalorder %s392_s26, %s590_s3 }
  0x28   :  { %p398_p4 = pnand %p396_p3, %p393_p2 }
  0x2a   :  { %401 = shalt.err (!%p398_p4)
}
  0x2b   :  { %s402_s9 = scalar_lea.vmem %s46_s14, 512  ;;  %p407_p6 = scmp.lt.s32.totalorder %s46_s14, %s46_s14 }
  0x2c   :  { %p403_p5 = scmp.ne.s32.totalorder %s46_s14, %s402_s9  ;;  %p408_p7 = scmp.lt.s32.totalorder %s402_s9, %s402_s9 }
  0x2e   :  { %p409_p8 = por %p408_p7, %p407_p6 }
  0x30   :  { %p410_p9 = pnand %p409_p8, %p403_p5 }
  0x32   :  { %413 = shalt.err (!%p410_p9)
}
  0x33   :  { %51 = dma.hbm_to_vmem [thread:$0]  %s590_s3, 512, %s46_s14, [#allocation6], %s467_s7, %s467_s7, %s468_s8  }
  0x34   :  { %458 = dma.done.wait [#allocation3], 128  }
  0x35   :  { %459 = vsyncadd [#allocation3], 4294967168 }
  0x36   :  { %460 = dma.done.wait [#allocation6], 1024  }
  0x37   :  { %461 = vsyncadd [#allocation6], 4294966272  ;;  %v471_v0 = vmov 0.0|0.0   ;;  %vm472_vm0 = vmmov 0   ;;  %v473_v1 = vmov 0.0   ;;  %v64_v2 = vld [vmem:[#allocation5] sm:$0xff] }
  0x38   :  { %321 = vmatprep.subr.bf16.mxu0 %v471_v0  ;;  %307 = vmatprep.mubr.msk.f32.mxu0 %vm472_vm0, %v473_v1  ;;  %v65_v3 = vld [vmem:[#allocation5 + $0x8] sm:$0xff]  ;;  %v66_v4 = vld [vmem:[#allocation5 + $0x10] sm:$0xff]  ;;  %v67_v6 = vld [vmem:[#allocation5 + $0x18] sm:$0xff]  ;;  %vm79_vm1 = vcmask 261120   ;;  %vm235_vm2 = vcmask 523264  }
  0x39   :  { %327 = vmatprep.subr.bf16.mxu1 %v471_v0  ;;  %318 = vmatprep.mubr.msk.f32.mxu1 %vm472_vm0, %v473_v1  ;;  %v322_v5 = vpack.c.bf16 %v65_v3, %v64_v2  ;;  %v325_v7 = vpack.c.bf16 %v67_v6, %v66_v4  ;;  %v63_v8 = vld [vmem:[#allocation2] sm:$0xff]  ;;  %v68_v9 = vld [vmem:[#allocation7] sm:$0xff]  ;;  %v69_v10 = vld [vmem:[#allocation7 + $0x8] sm:$0xff] }
  0x3a   :  { %v328_v11 = vpack.c.bf16 %v69_v10, %v68_v9  ;;  %v70_v12 = vld [vmem:[#allocation7 + $0x10] sm:$0xff]  ;;  %v71_v13 = vld [vmem:[#allocation7 + $0x18] sm:$0xff] }
  0x3b   :  { %323 = vmatpush3.bf16.msra.mxu0 %v322_v5  ;;  %v331_v14 = vpack.c.bf16 %v71_v13, %v70_v12  ;;  %v285_v15 = vld [vmem:[%s589_s2] ss:$0 sm:$0xff]  ;;  %s474_s2 = smov [#allocation8]  }
  0x3c   :  { %324 = vmatprep.subr.bf16.mxu0 %v471_v0  ;;  %329 = vmatpush3.bf16.msra.mxu1 %v328_v11  ;;  %v287_v21 = vld [vmem:[%s591_s4] ss:$0 sm:$0xff]  ;;  %s261_s12 = sshll.u32 %s474_s2, 4  ;;  %s262_s12 = int_to_ptr.vmem [resolvable:$true] %s261_s12 }
  0x3d   :  { %330 = vmatprep.subr.bf16.mxu1 %v471_v0  ;;  %s414_s4 = scalar_lea.vmem %s262_s12, 128  ;;  %p419_p11 = scmp.lt.s32.totalorder %s262_s12, %s262_s12 }
  0x3e   :  { %p415_p10 = scmp.ne.s32.totalorder %s262_s12, %s414_s4  ;;  %p420_p12 = scmp.lt.s32.totalorder %s414_s4, %s414_s4 }
  0x3f   :  { %326 = vmatpush3.bf16.msra.mxu0 %v325_v7 }
  0x40   :  { %332 = vmatpush3.bf16.msra.mxu1 %v331_v14  ;;  %p421_p13 = por %p420_p12, %p419_p11 }
  0x42   :  { %308 = vmatmul.mubr.msk.f32.vlgmr.msra.gmra.mrb[0].mxu0 %vm79_vm1, %v63_v8  ;;  %p422_p0 = pnand %p421_p13, %p415_p10 }
 0x115   :  { %v149_v16 = vpop.f32.mrb[0].mxu0 }
 0x116   :  { %v150_v17 = vadd.f32 %v285_v15, %v149_v16  ;;  %v309_v18 = vpop.f32.mrb[1].mxu0 }
 0x118   :  { %v153_v19 = vmul.f32 0.2, %v150_v17 }
 0x11a   :  { %v154_v20 = vmax.f32 %v150_v17, %v153_v19 }
 0x11c   :  { %247 = vst.msk [vmem:[#allocation8] sm:$0xff] %vm79_vm1, %v154_v20  ;;  %319 = vmatmul.mubr.msk.f32.vlgmr.msra.gmra.mrb[0].mxu1 %vm79_vm1, %v154_v20 }
 0x1ef   :  { %v231_v22 = vpop.f32.mrb[0].mxu1 }
 0x1f0   :  { %v232_v23 = vadd.f32 %v287_v21, %v231_v22  ;;  %v320_v24 = vpop.f32.mrb[1].mxu1 }
 0x1f2   :  { %v236_v25 = vsel %vm235_vm2, %v232_v23, -inf  ;;  %248 = vst.msk [vmem:[#allocation9] sm:$0xff] %vm235_vm2, %v232_v23 }
 0x1f3   :  { %237 = vmax.xlane.f32.xlu0 %v236_v25 }
 0x280   :  { %v238_v26 = vpop.xlane.xlu0 %237 }
 0x281   :  { %v239_v27 = vsub.f32 %v232_v23, %v238_v26 }
 0x283   :  { %v240_v28 = vmul.f32 1.442695, %v239_v27 }
 0x285   :  { %344 = vpow2.f32 %v240_v28 }
 0x28f   :  { %v345_v29 = vpop.eup %344 }
 0x290   :  { %v242_v30 = vsel %vm235_vm2, %v345_v29, 0.0 }
 0x291   :  { %243 = vadd.xlane.f32.xlu0 %v242_v30 }
 0x31e   :  { %v244_v31 = vpop.xlane.xlu0 %243 }
 0x31f   :  { %346 = vrcp.f32 %v244_v31 }
 0x320   :  { %425 = shalt.err (!%p422_p0)
}
 0x321   :  { %s426_s15 = scalar_lea.hbm %s592_s5, 128 }
 0x322   :  { %p427_p1 = scmp.ne.s32.totalorder %s592_s5, %s426_s15  ;;  %p430_p2 = scmp.lt.u32.totalorder %s426_s15, %s592_s5 }
 0x324   :  { %p432_p3 = pnand %p430_p2, %p427_p1 }
 0x326   :  { %435 = shalt.err (!%p432_p3)
}
 0x327   :  { %264 = dma.vmem_to_hbm [thread:$0]  %s262_s12, 128, %s592_s5, [#allocation4]   ;;  %vm253_vm3 = vcmask 1048064  }
 0x328   :  { %s475_s1 = smov 64   ;;  %s476_s22 = smov [#allocation9]  }
 0x329   :  { %v347_v32 = vpop.eup %346  ;;  %s271_s23 = sshll.u32 %s476_s22, 4  ;;  %s272_s23 = int_to_ptr.vmem [resolvable:$true] %s271_s23 }
 0x32a   :  { %v246_v33 = vmul.f32 %v347_v32, %v345_v29  ;;  %s436_s24 = scalar_lea.vmem %s272_s23, 128  ;;  %p441_p5 = scmp.lt.s32.totalorder %s272_s23, %s272_s23 }
 0x32b   :  { %p437_p4 = scmp.ne.s32.totalorder %s272_s23, %s436_s24  ;;  %p442_p6 = scmp.lt.s32.totalorder %s436_s24, %s436_s24 }
 0x32c   :  { %250 = vrot.lane.b32.xlu1 %v246_v33, %s475_s1 }
 0x32d   :  { %p443_p7 = por %p442_p6, %p441_p5 }
 0x32f   :  { %p444_p8 = pnand %p443_p7, %p437_p4 }
 0x39e   :  { %v251_v34 = vpop.permute.xlu1 %250 }
 0x39f   :  { %254 = vst.msk [vmem:[#allocation9] sm:$0xff] %vm253_vm3, %v251_v34 }
 0x3a0   :  { %447 = shalt.err (!%p444_p8)
}
 0x3a1   :  { %s448_s5 = scalar_lea.hbm %s593_s6, 128 }
 0x3a2   :  { %p449_p9 = scmp.ne.s32.totalorder %s593_s6, %s448_s5  ;;  %p452_p10 = scmp.lt.u32.totalorder %s448_s5, %s593_s6 }
 0x3a4   :  { %p454_p11 = pnand %p452_p10, %p449_p9 }
 0x3a6   :  { %457 = shalt.err (!%p454_p11)
}
 0x3a7   :  { %274 = dma.vmem_to_hbm [thread:$0]  %s272_s23, 128, %s593_s6, [#allocation10]  }
 0x3a8   :  { %462 = dma.done.wait [#allocation4], 128  }
 0x3a9   :  { %463 = vsyncadd [#allocation4], 4294967168 }
 0x3aa   :  { %464 = dma.done.wait [#allocation10], 128  }
 0x3ab   :  { %465 = vsyncadd [#allocation10], 4294967168 }
 0x3ac   :  { %281 = vsyncpa [#allocation3], 1 }
 0x3ad   :  { %282 = vsyncpa [#allocation6], 1 }
 0x3ae   :  { %283 = vsyncpa [#allocation4], 1 }
 0x3af   :  { %284 = vsyncpa [#allocation10], 1 }

// kernel: tpu_custom_call.1
= control target key start
LH: loop header
LB: loop body
LE: loop exit
PB: predicated region body
PF: predicated region fallthrough
CT: control target
= control target key end

     0   :  { %12 = vsyncpa [#allocation3], 0  ;;  %s587_s0 = inlined_call_operand.hbm [shape: f32[8,32], index: 0, kind: input, shape index: {}]   ;;  %s588_s1 = inlined_call_operand.hbm [shape: f32[32,32], index: 1, kind: input, shape index: {}]   ;;  %s589_s2 = inlined_call_operand.vmem [shape: f32[1,32], index: 2, kind: input, shape index: {}]   ;;  %s590_s3 = inlined_call_operand.hbm [shape: f32[32,64], index: 3, kind: input, shape index: {}]   ;;  %s591_s4 = inlined_call_operand.vmem [shape: f32[1,64], index: 4, kind: input, shape index: {}]   ;;  %s592_s5 = inlined_call_operand.hbm [shape: f32[8,32], index: 5, kind: output, shape index: {0}]   ;;  %s593_s6 = inlined_call_operand.hbm [shape: f32[8,128], index: 6, kind: output, shape index: {1}]  }
   0x1   :  { %13 = vsyncpa [#allocation6], 0 }
   0x2   :  { %14 = vsyncpa [#allocation4], 0 }
   0x3   :  { %15 = vsyncpa [#allocation10], 0  ;;  %s466_s21 = smov [#allocation5]   ;;  %s348_s25 = scalar_lea.hbm %s588_s1, 512 }
   0x4   :  { %s31_s22 = sshll.u32 %s466_s21, 4  ;;  %p349_p0 = scmp.ne.s32.totalorder %s588_s1, %s348_s25  ;;  %s32_s22 = int_to_ptr.vmem [resolvable:$true] %s31_s22 }
   0x5   :  { %p352_p1 = scmp.lt.u32.totalorder %s348_s25, %s588_s1 }
   0x7   :  { %p354_p2 = pnand %p352_p1, %p349_p0 }
   0x9   :  { %357 = shalt.err (!%p354_p2)
}
   0xa   :  { %s358_s30 = scalar_lea.vmem %s32_s22, 512  ;;  %p363_p4 = scmp.lt.s32.totalorder %s32_s22, %s32_s22 }
   0xb   :  { %p359_p3 = scmp.ne.s32.totalorder %s32_s22, %s358_s30  ;;  %p364_p5 = scmp.lt.s32.totalorder %s358_s30, %s358_s30 }
   0xd   :  { %p365_p6 = por %p364_p5, %p363_p4 }
   0xf   :  { %p366_p7 = pnand %p365_p6, %p359_p3 }
  0x11   :  { %369 = shalt.err (!%p366_p7)
}
  0x12   :  { %s467_s7 = smov 128   ;;  %s468_s8 = smov 8  }
  0x13   :  { %37 = dma.hbm_to_vmem [thread:$0]  %s588_s1, 512, %s32_s22, [#allocation6], %s467_s7, %s467_s7, %s468_s8  }
  0x14   :  { %s469_s11 = smov [#allocation2]   ;;  %s470_s13 = smov [#allocation7]  }
  0x15   :  { %s22_s12 = sshll.u32 %s469_s11, 4  ;;  %s45_s14 = sshll.u32 %s470_s13, 4  ;;  %s23_s12 = int_to_ptr.vmem [resolvable:$true] %s22_s12  ;;  %s46_s14 = int_to_ptr.vmem [resolvable:$true] %s45_s14 }
  0x16   :  { %s370_s17 = scalar_lea.hbm %s587_s0, 128 }
  0x17   :  { %p371_p8 = scmp.ne.s32.totalorder %s587_s0, %s370_s17  ;;  %p374_p9 = scmp.lt.u32.totalorder %s370_s17, %s587_s0 }
  0x19   :  { %p376_p10 = pnand %p374_p9, %p371_p8 }
  0x1b   :  { %379 = shalt.err (!%p376_p10)
}
  0x1c   :  { %s380_s1 = scalar_lea.vmem %s23_s12, 128  ;;  %p385_p12 = scmp.lt.s32.totalorder %s23_s12, %s23_s12 }
  0x1d   :  { %p381_p11 = scmp.ne.s32.totalorder %s23_s12, %s380_s1  ;;  %p386_p13 = scmp.lt.s32.totalorder %s380_s1, %s380_s1 }
  0x1f   :  { %p387_p0 = por %p386_p13, %p385_p12 }
  0x21   :  { %p388_p1 = pnand %p387_p0, %p381_p11 }
  0x23   :  { %391 = shalt.err (!%p388_p1)
}
  0x24   :  { %25 = dma.hbm_to_vmem [thread:$0]  %s587_s0, 128, %s23_s12, [#allocation3]  }
  0x25   :  { %s392_s26 = scalar_lea.hbm %s590_s3, 512 }
  0x26   :  { %p393_p2 = scmp.ne.s32.totalorder %s590_s3, %s392_s26  ;;  %p396_p3 = scmp.lt.u32.totalorder %s392_s26, %s590_s3 }
  0x28   :  { %p398_p4 = pnand %p396_p3, %p393_p2 }
  0x2a   :  { %401 = shalt.err (!%p398_p4)
}
  0x2b   :  { %s402_s9 = scalar_lea.vmem %s46_s14, 512  ;;  %p407_p6 = scmp.lt.s32.totalorder %s46_s14, %s46_s14 }
  0x2c   :  { %p403_p5 = scmp.ne.s32.totalorder %s46_s14, %s402_s9  ;;  %p408_p7 = scmp.lt.s32.totalorder %s402_s9, %s402_s9 }
  0x2e   :  { %p409_p8 = por %p408_p7, %p407_p6 }
  0x30   :  { %p410_p9 = pnand %p409_p8, %p403_p5 }
  0x32   :  { %413 = shalt.err (!%p410_p9)
}
  0x33   :  { %51 = dma.hbm_to_vmem [thread:$0]  %s590_s3, 512, %s46_s14, [#allocation6], %s467_s7, %s467_s7, %s468_s8  }
  0x34   :  { %458 = dma.done.wait [#allocation3], 128  }
  0x35   :  { %459 = vsyncadd [#allocation3], 4294967168 }
  0x36   :  { %460 = dma.done.wait [#allocation6], 1024  }
  0x37   :  { %461 = vsyncadd [#allocation6], 4294966272  ;;  %v471_v0 = vmov 0.0|0.0   ;;  %vm472_vm0 = vmmov 0   ;;  %v473_v1 = vmov 0.0   ;;  %v64_v2 = vld [vmem:[#allocation5] sm:$0xff] }
  0x38   :  { %321 = vmatprep.subr.bf16.mxu0 %v471_v0  ;;  %307 = vmatprep.mubr.msk.f32.mxu0 %vm472_vm0, %v473_v1  ;;  %v65_v3 = vld [vmem:[#allocation5 + $0x8] sm:$0xff]  ;;  %v66_v4 = vld [vmem:[#allocation5 + $0x10] sm:$0xff]  ;;  %v67_v6 = vld [vmem:[#allocation5 + $0x18] sm:$0xff]  ;;  %vm79_vm1 = vcmask 261120   ;;  %vm235_vm2 = vcmask 523264  }
  0x39   :  { %327 = vmatprep.subr.bf16.mxu1 %v471_v0  ;;  %318 = vmatprep.mubr.msk.f32.mxu1 %vm472_vm0, %v473_v1  ;;  %v322_v5 = vpack.c.bf16 %v65_v3, %v64_v2  ;;  %v325_v7 = vpack.c.bf16 %v67_v6, %v66_v4  ;;  %v63_v8 = vld [vmem:[#allocation2] sm:$0xff]  ;;  %v68_v9 = vld [vmem:[#allocation7] sm:$0xff]  ;;  %v69_v10 = vld [vmem:[#allocation7 + $0x8] sm:$0xff] }
  0x3a   :  { %v328_v11 = vpack.c.bf16 %v69_v10, %v68_v9  ;;  %v70_v12 = vld [vmem:[#allocation7 + $0x10] sm:$0xff]  ;;  %v71_v13 = vld [vmem:[#allocation7 + $0x18] sm:$0xff] }
  0x3b   :  { %323 = vmatpush3.bf16.msra.mxu0 %v322_v5  ;;  %v331_v14 = vpack.c.bf16 %v71_v13, %v70_v12  ;;  %v285_v15 = vld [vmem:[%s589_s2] ss:$0 sm:$0xff]  ;;  %s474_s2 = smov [#allocation8]  }
  0x3c   :  { %324 = vmatprep.subr.bf16.mxu0 %v471_v0  ;;  %329 = vmatpush3.bf16.msra.mxu1 %v328_v11  ;;  %v287_v21 = vld [vmem:[%s591_s4] ss:$0 sm:$0xff]  ;;  %s261_s12 = sshll.u32 %s474_s2, 4  ;;  %s262_s12 = int_to_ptr.vmem [resolvable:$true] %s261_s12 }
  0x3d   :  { %330 = vmatprep.subr.bf16.mxu1 %v471_v0  ;;  %s414_s4 = scalar_lea.vmem %s262_s12, 128  ;;  %p419_p11 = scmp.lt.s32.totalorder %s262_s12, %s262_s12 }
  0x3e   :  { %p415_p10 = scmp.ne.s32.totalorder %s262_s12, %s414_s4  ;;  %p420_p12 = scmp.lt.s32.totalorder %s414_s4, %s414_s4 }
  0x3f   :  { %326 = vmatpush3.bf16.msra.mxu0 %v325_v7 }
  0x40   :  { %332 = vmatpush3.bf16.msra.mxu1 %v331_v14  ;;  %p421_p13 = por %p420_p12, %p419_p11 }
  0x42   :  { %308 = vmatmul.mubr.msk.f32.vlgmr.msra.gmra.mrb[0].mxu0 %vm79_vm1, %v63_v8  ;;  %p422_p0 = pnand %p421_p13, %p415_p10 }
 0x115   :  { %v149_v16 = vpop.f32.mrb[0].mxu0 }
 0x116   :  { %v150_v17 = vadd.f32 %v285_v15, %v149_v16  ;;  %v309_v18 = vpop.f32.mrb[1].mxu0 }
 0x118   :  { %v153_v19 = vmul.f32 0.2, %v150_v17 }
 0x11a   :  { %v154_v20 = vmax.f32 %v150_v17, %v153_v19 }
 0x11c   :  { %247 = vst.msk [vmem:[#allocation8] sm:$0xff] %vm79_vm1, %v154_v20  ;;  %319 = vmatmul.mubr.msk.f32.vlgmr.msra.gmra.mrb[0].mxu1 %vm79_vm1, %v154_v20 }
 0x1ef   :  { %v231_v22 = vpop.f32.mrb[0].mxu1 }
 0x1f0   :  { %v232_v23 = vadd.f32 %v287_v21, %v231_v22  ;;  %v320_v24 = vpop.f32.mrb[1].mxu1 }
 0x1f2   :  { %v236_v25 = vsel %vm235_vm2, %v232_v23, -inf  ;;  %248 = vst.msk [vmem:[#allocation9] sm:$0xff] %vm235_vm2, %v232_v23 }
 0x1f3   :  { %237 = vmax.xlane.f32.xlu0 %v236_v25 }
 0x280   :  { %v238_v26 = vpop.xlane.xlu0 %237 }
 0x281   :  { %v239_v27 = vsub.f32 %v232_v23, %v238_v26 }
 0x283   :  { %v240_v28 = vmul.f32 1.442695, %v239_v27 }
 0x285   :  { %344 = vpow2.f32 %v240_v28 }
 0x28f   :  { %v345_v29 = vpop.eup %344 }
 0x290   :  { %v242_v30 = vsel %vm235_vm2, %v345_v29, 0.0 }
 0x291   :  { %243 = vadd.xlane.f32.xlu0 %v242_v30 }
 0x31e   :  { %v244_v31 = vpop.xlane.xlu0 %243 }
 0x31f   :  { %346 = vrcp.f32 %v244_v31 }
 0x320   :  { %425 = shalt.err (!%p422_p0)
}
 0x321   :  { %s426_s15 = scalar_lea.hbm %s592_s5, 128 }
 0x322   :  { %p427_p1 = scmp.ne.s32.totalorder %s592_s5, %s426_s15  ;;  %p430_p2 = scmp.lt.u32.totalorder %s426_s15, %s592_s5 }
 0x324   :  { %p432_p3 = pnand %p430_p2, %p427_p1 }
 0x326   :  { %435 = shalt.err (!%p432_p3)
}
 0x327   :  { %264 = dma.vmem_to_hbm [thread:$0]  %s262_s12, 128, %s592_s5, [#allocation4]   ;;  %vm253_vm3 = vcmask 1048064  }
 0x328   :  { %s475_s1 = smov 64   ;;  %s476_s22 = smov [#allocation9]  }
 0x329   :  { %v347_v32 = vpop.eup %346  ;;  %s271_s23 = sshll.u32 %s476_s22, 4  ;;  %s272_s23 = int_to_ptr.vmem [resolvable:$true] %s271_s23 }
 0x32a   :  { %v246_v33 = vmul.f32 %v347_v32, %v345_v29  ;;  %s436_s24 = scalar_lea.vmem %s272_s23, 128  ;;  %p441_p5 = scmp.lt.s32.totalorder %s272_s23, %s272_s23 }
 0x32b   :  { %p437_p4 = scmp.ne.s32.totalorder %s272_s23, %s436_s24  ;;  %p442_p6 = scmp.lt.s32.totalorder %s436_s24, %s436_s24 }
 0x32c   :  { %250 = vrot.lane.b32.xlu1 %v246_v33, %s475_s1 }
 0x32d   :  { %p443_p7 = por %p442_p6, %p441_p5 }
 0x32f   :  { %p444_p8 = pnand %p443_p7, %p437_p4 }
 0x39e   :  { %v251_v34 = vpop.permute.xlu1 %250 }
 0x39f   :  { %254 = vst.msk [vmem:[#allocation9] sm:$0xff] %vm253_vm3, %v251_v34 }
 0x3a0   :  { %447 = shalt.err (!%p444_p8)
}
 0x3a1   :  { %s448_s5 = scalar_lea.hbm %s593_s6, 128 }
 0x3a2   :  { %p449_p9 = scmp.ne.s32.totalorder %s593_s6, %s448_s5  ;;  %p452_p10 = scmp.lt.u32.totalorder %s448_s5, %s593_s6 }
 0x3a4   :  { %p454_p11 = pnand %p452_p10, %p449_p9 }
 0x3a6   :  { %457 = shalt.err (!%p454_p11)
}
 0x3a7   :  { %274 = dma.vmem_to_hbm [thread:$0]  %s272_s23, 128, %s593_s6, [#allocation10]  }
 0x3a8   :  { %462 = dma.done.wait [#allocation4], 128  }
 0x3a9   :  { %463 = vsyncadd [#allocation4], 4294967168 }
 0x3aa   :  { %464 = dma.done.wait [#allocation10], 128  }
 0x3ab   :  { %465 = vsyncadd [#allocation10], 4294967168 }
 0x3ac   :  { %281 = vsyncpa [#allocation3], 1 }
 0x3ad   :  { %282 = vsyncpa [#allocation6], 1 }
 0x3ae   :  { %283 = vsyncpa [#allocation4], 1 }
 0x3af   :  { %284 = vsyncpa [#allocation10], 1 }

// kernel: tpu_custom_call.1
= control target key start
LH: loop header
LB: loop body
LE: loop exit
PB: predicated region body
PF: predicated region fallthrough
CT: control target
= control target key end

     0   :  { %13 = vsyncpa [#allocation3], 0  ;;  %s632_s0 = inlined_call_operand.hbm [shape: f32[8,32], index: 0, kind: input, shape index: {}]   ;;  %s633_s1 = inlined_call_operand.hbm [shape: f32[32,32], index: 1, kind: input, shape index: {}]   ;;  %s634_s2 = inlined_call_operand.vmem [shape: f32[1,32], index: 2, kind: input, shape index: {}]   ;;  %s635_s3 = inlined_call_operand.hbm [shape: f32[32,128], index: 3, kind: input, shape index: {}]   ;;  %s636_s4 = inlined_call_operand.vmem [shape: f32[1,128], index: 4, kind: input, shape index: {}]   ;;  %s637_s5 = inlined_call_operand.hbm [shape: f32[8,32], index: 5, kind: output, shape index: {0}]   ;;  %s638_s6 = inlined_call_operand.hbm [shape: f32[8,128], index: 6, kind: output, shape index: {1}]   ;;  %s639_s7 = inlined_call_operand.hbm [shape: f32[8,128], index: 7, kind: output, shape index: {2}]  }
   0x1   :  { %14 = vsyncpa [#allocation6], 0 }
   0x2   :  { %15 = vsyncpa [#allocation4], 0 }
   0x3   :  { %16 = vsyncpa [#allocation10], 0  ;;  %s494_s24 = smov [#allocation5]   ;;  %s354_s28 = scalar_lea.hbm %s633_s1, 512 }
   0x4   :  { %s32_s25 = sshll.u32 %s494_s24, 4  ;;  %p355_p0 = scmp.ne.s32.totalorder %s633_s1, %s354_s28  ;;  %s33_s25 = int_to_ptr.vmem [resolvable:$true] %s32_s25 }
   0x5   :  { %p358_p1 = scmp.lt.u32.totalorder %s354_s28, %s633_s1 }
   0x7   :  { %p360_p2 = pnand %p358_p1, %p355_p0 }
   0x9   :  { %363 = shalt.err (!%p360_p2)
}
   0xa   :  { %s364_s10 = scalar_lea.vmem %s33_s25, 512  ;;  %p369_p4 = scmp.lt.s32.totalorder %s33_s25, %s33_s25 }
   0xb   :  { %p365_p3 = scmp.ne.s32.totalorder %s33_s25, %s364_s10  ;;  %p370_p5 = scmp.lt.s32.totalorder %s364_s10, %s364_s10 }
   0xd   :  { %p371_p6 = por %p370_p5, %p369_p4 }
   0xf   :  { %p372_p7 = pnand %p371_p6, %p365_p3 }
  0x11   :  { %375 = shalt.err (!%p372_p7)
}
  0x12   :  { %s495_s11 = smov 128   ;;  %s496_s12 = smov 8  }
  0x13   :  { %38 = dma.hbm_to_vmem [thread:$0]  %s633_s1, 512, %s33_s25, [#allocation6], %s495_s11, %s495_s11, %s496_s12  }
  0x14   :  { %s497_s15 = smov [#allocation2]   ;;  %s498_s17 = smov [#allocation7]  }
  0x15   :  { %s23_s16 = sshll.u32 %s497_s15, 4  ;;  %s46_s18 = sshll.u32 %s498_s17, 4  ;;  %s24_s16 = int_to_ptr.vmem [resolvable:$true] %s23_s16  ;;  %s47_s18 = int_to_ptr.vmem [resolvable:$true] %s46_s18 }
  0x16   :  { %s376_s21 = scalar_lea.hbm %s632_s0, 128 }
  0x17   :  { %p377_p8 = scmp.ne.s32.totalorder %s632_s0, %s376_s21  ;;  %p380_p9 = scmp.lt.u32.totalorder %s376_s21, %s632_s0 }
  0x19   :  { %p382_p10 = pnand %p380_p9, %p377_p8 }
  0x1b   :  { %385 = shalt.err (!%p382_p10)
}
  0x1c   :  { %s386_s1 = scalar_lea.vmem %s24_s16, 128  ;;  %p391_p12 = scmp.lt.s32.totalorder %s24_s16, %s24_s16 }
  0x1d   :  { %p387_p11 = scmp.ne.s32.totalorder %s24_s16, %s386_s1  ;;  %p392_p13 = scmp.lt.s32.totalorder %s386_s1, %s386_s1 }
  0x1f   :  { %p393_p0 = por %p392_p13, %p391_p12 }
  0x21   :  { %p394_p1 = pnand %p393_p0, %p387_p11 }
  0x23   :  { %397 = shalt.err (!%p394_p1)
}
  0x24   :  { %26 = dma.hbm_to_vmem [thread:$0]  %s632_s0, 128, %s24_s16, [#allocation3]  }
  0x25   :  { %s398_s30 = scalar_lea.hbm %s635_s3, 512 }
  0x26   :  { %p399_p2 = scmp.ne.s32.totalorder %s635_s3, %s398_s30  ;;  %p402_p3 = scmp.lt.u32.totalorder %s398_s30, %s635_s3 }
  0x28   :  { %p404_p4 = pnand %p402_p3, %p399_p2 }
  0x2a   :  { %407 = shalt.err (!%p404_p4)
}
  0x2b   :  { %s408_s14 = scalar_lea.vmem %s47_s18, 512  ;;  %p413_p6 = scmp.lt.s32.totalorder %s47_s18, %s47_s18 }
  0x2c   :  { %p409_p5 = scmp.ne.s32.totalorder %s47_s18, %s408_s14  ;;  %p414_p7 = scmp.lt.s32.totalorder %s408_s14, %s408_s14 }
  0x2e   :  { %p415_p8 = por %p414_p7, %p413_p6 }
  0x30   :  { %p416_p9 = pnand %p415_p8, %p409_p5 }
  0x32   :  { %419 = shalt.err (!%p416_p9)
}
  0x33   :  { %52 = dma.hbm_to_vmem [thread:$0]  %s635_s3, 512, %s47_s18, [#allocation6], %s495_s11, %s495_s11, %s496_s12  }
  0x34   :  { %486 = dma.done.wait [#allocation3], 128  }
  0x35   :  { %487 = vsyncadd [#allocation3], 4294967168 }
  0x36   :  { %488 = dma.done.wait [#allocation6], 1024  }
  0x37   :  { %489 = vsyncadd [#allocation6], 4294966272  ;;  %v499_v0 = vmov 0.0|0.0   ;;  %vm500_vm0 = vmmov 0   ;;  %v501_v1 = vmov 0.0   ;;  %v65_v2 = vld [vmem:[#allocation5] sm:$0xff] }
  0x38   :  { %327 = vmatprep.subr.bf16.mxu0 %v499_v0  ;;  %313 = vmatprep.mubr.msk.f32.mxu0 %vm500_vm0, %v501_v1  ;;  %v66_v3 = vld [vmem:[#allocation5 + $0x8] sm:$0xff]  ;;  %v67_v4 = vld [vmem:[#allocation5 + $0x10] sm:$0xff]  ;;  %v68_v6 = vld [vmem:[#allocation5 + $0x18] sm:$0xff]  ;;  %vm80_vm1 = vcmask 261120   ;;  %s503_s18 = smov [#allocation8]  }
  0x39   :  { %333 = vmatprep.subr.bf16.mxu1 %v499_v0  ;;  %324 = vmatprep.mubr.msk.f32.mxu1 %vm500_vm0, %v501_v1  ;;  %v328_v5 = vpack.c.bf16 %v66_v3, %v65_v2  ;;  %v331_v7 = vpack.c.bf16 %v68_v6, %v67_v4  ;;  %v64_v8 = vld [vmem:[#allocation2] sm:$0xff]  ;;  %v69_v9 = vld [vmem:[#allocation7] sm:$0xff]  ;;  %v70_v10 = vld [vmem:[#allocation7 + $0x8] sm:$0xff]  ;;  %s254_s19 = sshll.u32 %s503_s18, 4  ;;  %s255_s19 = int_to_ptr.vmem [resolvable:$true] %s254_s19 }
  0x3a   :  { %v334_v11 = vpack.c.bf16 %v70_v10, %v69_v9  ;;  %v71_v12 = vld [vmem:[#allocation7 + $0x10] sm:$0xff]  ;;  %v72_v13 = vld [vmem:[#allocation7 + $0x18] sm:$0xff] }
  0x3b   :  { %329 = vmatpush3.bf16.msra.mxu0 %v328_v5  ;;  %v337_v14 = vpack.c.bf16 %v72_v13, %v71_v12  ;;  %v291_v15 = vld [vmem:[%s634_s2] ss:$0 sm:$0xff]  ;;  %s502_s2 = smov [#allocation9]  }
  0x3c   :  { %330 = vmatprep.subr.bf16.mxu0 %v499_v0  ;;  %335 = vmatpush3.bf16.msra.mxu1 %v334_v11  ;;  %v293_v21 = vld [vmem:[%s636_s4] ss:$0 sm:$0xff]  ;;  %s264_s17 = sshll.u32 %s502_s2, 4  ;;  %s265_s17 = int_to_ptr.vmem [resolvable:$true] %s264_s17 }
  0x3d   :  { %336 = vmatprep.subr.bf16.mxu1 %v499_v0  ;;  %s420_s20 = scalar_lea.vmem %s265_s17, 128  ;;  %p425_p11 = scmp.lt.s32.totalorder %s265_s17, %s265_s17 }
  0x3e   :  { %p421_p10 = scmp.ne.s32.totalorder %s265_s17, %s420_s20  ;;  %p426_p12 = scmp.lt.s32.totalorder %s420_s20, %s420_s20 }
  0x3f   :  { %332 = vmatpush3.bf16.msra.mxu0 %v331_v7 }
  0x40   :  { %338 = vmatpush3.bf16.msra.mxu1 %v337_v14  ;;  %p427_p13 = por %p426_p12, %p425_p11 }
  0x42   :  { %314 = vmatmul.mubr.msk.f32.vlgmr.msra.gmra.mrb[0].mxu0 %vm80_vm1, %v64_v8  ;;  %p428_p0 = pnand %p427_p13, %p421_p10 }
 0x115   :  { %v150_v16 = vpop.f32.mrb[0].mxu0 }
 0x116   :  { %v151_v17 = vadd.f32 %v291_v15, %v150_v16  ;;  %v315_v18 = vpop.f32.mrb[1].mxu0 }
 0x118   :  { %v154_v19 = vmul.f32 0.2, %v151_v17 }
 0x11a   :  { %v155_v20 = vmax.f32 %v151_v17, %v154_v19 }
 0x11c   :  { %245 = vst.msk [vmem:[#allocation8] sm:$0xff] %vm80_vm1, %v155_v20  ;;  %325 = vmatmul.mubr.msk.f32.vlgmr.msra.gmra.mrb[0].mxu1 %vm80_vm1, %v155_v20 }
 0x1ef   :  { %v232_v22 = vpop.f32.mrb[0].mxu1 }
 0x1f0   :  { %v233_v23 = vadd.f32 %v293_v21, %v232_v22  ;;  %v326_v24 = vpop.f32.mrb[1].mxu1 }
 0x1f2   :  { %246 = vst [vmem:[#allocation9] sm:$0xff] %v233_v23  ;;  %236 = vmax.xlane.f32.xlu0 %v233_v23 }
 0x27f   :  { %v237_v25 = vpop.xlane.xlu0 %236 }
 0x280   :  { %v238_v26 = vsub.f32 %v233_v23, %v237_v25 }
 0x282   :  { %v239_v27 = vmul.f32 1.442695, %v238_v26 }
 0x284   :  { %350 = vpow2.f32 %v239_v27 }
 0x28e   :  { %v351_v28 = vpop.eup %350 }
 0x28f   :  { %241 = vadd.xlane.f32.xlu0 %v351_v28 }
 0x290   :  { %431 = shalt.err (!%p428_p0)
}
 0x291   :  { %s432_s22 = scalar_lea.hbm %s638_s6, 128 }
 0x292   :  { %p433_p1 = scmp.ne.s32.totalorder %s638_s6, %s432_s22  ;;  %p436_p2 = scmp.lt.u32.totalorder %s432_s22, %s638_s6 }
 0x294   :  { %p438_p3 = pnand %p436_p2, %p433_p1 }
 0x296   :  { %441 = shalt.err (!%p438_p3)
}
 0x297   :  { %267 = dma.vmem_to_hbm [thread:$0]  %s265_s17, 128, %s638_s6, [#allocation10]  }
 0x298   :  { %s442_s28 = scalar_lea.vmem %s255_s19, 128  ;;  %p447_p5 = scmp.lt.s32.totalorder %s255_s19, %s255_s19 }
 0x299   :  { %p443_p4 = scmp.ne.s32.totalorder %s255_s19, %s442_s28  ;;  %p448_p6 = scmp.lt.s32.totalorder %s442_s28, %s442_s28 }
 0x29b   :  { %p449_p7 = por %p448_p6, %p447_p5 }
 0x29d   :  { %p450_p8 = pnand %p449_p7, %p443_p4 }
 0x29f   :  { %453 = shalt.err (!%p450_p8)
}
 0x2a0   :  { %s454_s8 = scalar_lea.hbm %s637_s5, 128 }
 0x2a1   :  { %p455_p9 = scmp.ne.s32.totalorder %s637_s5, %s454_s8  ;;  %p458_p10 = scmp.lt.u32.totalorder %s454_s8, %s637_s5 }
 0x2a3   :  { %p460_p11 = pnand %p458_p10, %p455_p9 }
 0x2a5   :  { %463 = shalt.err (!%p460_p11)
}
 0x2a6   :  { %257 = dma.vmem_to_hbm [thread:$0]  %s255_s19, 128, %s637_s5, [#allocation4]  }
 0x2a7   :  { %s504_s15 = smov [#allocation11]  }
 0x2a8   :  { %s274_s3 = sshll.u32 %s504_s15, 4  ;;  %s275_s3 = int_to_ptr.vmem [resolvable:$true] %s274_s3 }
 0x2a9   :  { %s464_s11 = scalar_lea.vmem %s275_s3, 128  ;;  %p469_p13 = scmp.lt.s32.totalorder %s275_s3, %s275_s3 }
 0x2aa   :  { %p465_p12 = scmp.ne.s32.totalorder %s275_s3, %s464_s11  ;;  %p470_p0 = scmp.lt.s32.totalorder %s464_s11, %s464_s11 }
 0x2ac   :  { %p471_p1 = por %p470_p0, %p469_p13 }
 0x2ae   :  { %p472_p2 = pnand %p471_p1, %p465_p12 }
 0x31c   :  { %v242_v29 = vpop.xlane.xlu0 %241 }
 0x31d   :  { %352 = vrcp.f32 %v242_v29 }
 0x327   :  { %v353_v30 = vpop.eup %352 }
 0x328   :  { %v244_v31 = vmul.f32 %v353_v30, %v351_v28 }
 0x32a   :  { %247 = vst [vmem:[#allocation11] sm:$0xff] %v244_v31 }
 0x32b   :  { %475 = shalt.err (!%p472_p2)
}
 0x32c   :  { %s476_s2 = scalar_lea.hbm %s639_s7, 128 }
 0x32d   :  { %p477_p3 = scmp.ne.s32.totalorder %s639_s7, %s476_s2  ;;  %p480_p4 = scmp.lt.u32.totalorder %s476_s2, %s639_s7 }
 0x32f   :  { %p482_p5 = pnand %p480_p4, %p477_p3 }
 0x331   :  { %485 = shalt.err (!%p482_p5)
}
 0x332   :  { %277 = dma.vmem_to_hbm [thread:$0]  %s275_s3, 128, %s639_s7, [#allocation10]  }
 0x333   :  { %490 = dma.done.wait [#allocation4], 128  }
 0x334   :  { %491 = vsyncadd [#allocation4], 4294967168 }
 0x335   :  { %492 = dma.done.wait [#allocation10], 256  }
 0x336   :  { %493 = vsyncadd [#allocation10], 4294967040 }
 0x337   :  { %287 = vsyncpa [#allocation3], 1 }
 0x338   :  { %288 = vsyncpa [#allocation6], 1 }
 0x339   :  { %289 = vsyncpa [#allocation4], 1 }
 0x33a   :  { %290 = vsyncpa [#allocation10], 1 }

</bundles_post_ra>
